<compile_context>
chip_gen: v6e
topology: v6e:2x2x1
jax: 0.10.0
libtpu: 0.0.40
codegen_flags: <defaults>
</compile_context>

<pallas_src>
import functools

import jax
import jax.numpy as jnp
from jax.experimental import pallas as pl
from jax.experimental.pallas import tpu as pltpu


_MIB = 1 << 20
_HIGHEST = jax.lax.Precision.HIGHEST


@functools.lru_cache(maxsize=None)
def _tpu_vmem_and_cores():
    """(per-core VMEM bytes, TensorCores per chip) with safe fallbacks."""
    vmem, cores = None, None
    try:
        info = pltpu.get_tpu_info()
        vmem = int(getattr(info, "vmem_capacity_bytes", 0)) or None
        for name in ("tensorcores_per_chip", "num_cores", "core_count"):
            val = getattr(info, name, None)
            if val:
                cores = int(val)
                break
        if cores is None and vmem is not None:
            # 64 MiB-per-core VMEM is unique to v7x, which has 2 TCs per chip.
            cores = 2 if vmem <= 64 * _MIB else 1
    except Exception:  # non-TPU backend / interpret mode / older jax
        pass
    if vmem is None:
        vmem = 64 * _MIB          # conservative default: v7x per-core VMEM
    if cores is None:
        cores = 1
    return vmem, cores


def _vmem_limit(working_set_bytes, vmem_cap):
    # working set + compiler-internal scratch headroom, capped below physical.
    need = working_set_bytes + 2 * _MIB
    return int(min(max(need, 16 * _MIB), int(0.9 * vmem_cap)))


def _choose_c_tile(c, hw, itemsize, budget):
    """Largest multiple-of-8 divisor of C whose double-buffered (tc, HW) input
    block fits `budget`; falls back to full C when C cannot be tiled legally."""
    if 2 * c * hw * itemsize <= budget:
        return c
    best = None
    for tc in range(8, c, 8):
        if c % tc == 0 and 2 * tc * hw * itemsize <= budget:
            best = tc
    if best is not None:
        return best
    return 8 if c % 8 == 0 else c


def _choose_hw_tile(hw, c, itemsize, budget):
    """Largest lane-aligned HW tile whose in+out double-buffered blocks fit."""
    if 4 * c * hw * itemsize <= budget:
        return hw                 # single full-extent block (always legal)
    max_cols = budget // (4 * c * itemsize)
    return max((max_cols // 128) * 128, 128)


# ------------------------------- fused path ---------------------------------
def _fused_se_kernel(x_ref, w1_ref, w2_ref, o_ref, *, hw):
    # x_ref: (1, C, HW); w1: (Cr, C); w2: (C, Cr); o_ref: (1, C, HW)
    x = x_ref[0]                                                   # (C, HW)
    # Global average pool as an MXU matvec against a ones vector; HIGHEST
    # precision so the mean matches the f32 reference (no bf16-pass drift).
    ones = jnp.ones((hw, 1), dtype=x.dtype)
    y = jnp.dot(x, ones, preferred_element_type=jnp.float32,
                precision=_HIGHEST) * (1.0 / hw)                   # (C, 1)
    h = jnp.maximum(
        jnp.dot(w1_ref[...], y, preferred_element_type=jnp.float32,
                precision=_HIGHEST), 0.0)                          # (Cr, 1)
    z = jnp.dot(w2_ref[...], h, preferred_element_type=jnp.float32,
                precision=_HIGHEST)                                # (C, 1)
    scale = jnp.clip(z + 3.0, 0.0, 6.0) * (1.0 / 6.0)              # hsigmoid
    o_ref[0] = (x * scale).astype(o_ref.dtype)


# ------------------------------- split path ---------------------------------
def _pool_kernel(x_ref, sum_ref):
    # x_ref: (1, tc, HW) -> per-channel sums (1, tc, 1).  Every block spans
    # the FULL HW extent, so there are no partial reduction tiles and no
    # masking is needed.
    x = x_ref[0]
    ones = jnp.ones((x.shape[-1], 1), dtype=x.dtype)
    sum_ref[0] = jnp.dot(x, ones, preferred_element_type=jnp.float32,
                         precision=_HIGHEST)


def _rescale_kernel(x_ref, scale_ref, o_ref):
    # Pure streaming load -> mul -> store; elementwise, so a partial last HW
    # tile is handled consistently by the pipeline.
    o_ref[0] = (x_ref[0] * scale_ref[0]).astype(o_ref.dtype)


# -------------------------------- wrapper ------------------------------------
def se_module(x, w1, w2, *, force_split=False, hw_tile=None, c_tile=None):
    """SEModule forward.  x: (B, C, H, W);  w1: (C//r, C);  w2: (C, C//r)."""
    B, C, H, W = x.shape
    HW = H * W
    Cr = w1.shape[0]
    isz = jnp.dtype(x.dtype).itemsize
    wsz = jnp.dtype(w1.dtype).itemsize
    x_flat = x.reshape(B, C, HW)

    vmem_cap, n_cores = _tpu_vmem_and_cores()
    fused_budget = int(0.7 * vmem_cap)    # ~90 MiB on v5e/v6e, ~45 MiB on v7x

    slab = C * HW * isz
    w_bytes = 2 * C * Cr * wsz
    # in + out slabs double-buffered; weights have constant index_maps so they
    # are counted once in the gate (and doubled only in the limit as margin).
    fused_working = 4 * slab + w_bytes
    fused_fits = fused_working + 2 * _MIB <= fused_budget
    # v7x: a B==1 fused grid leaves one TensorCore idle; the split path's
    # (b, h)-parallel rescale keeps both cores' DMA streams busy.
    prefer_split = B < n_cores

    if not force_split and fused_fits and not prefer_split:
        out = pl.pallas_call(
            functools.partial(_fused_se_kernel, hw=HW),
            out_shape=jax.ShapeDtypeStruct((B, C, HW), x.dtype),
            grid_spec=pltpu.PrefetchScalarGridSpec(
                num_scalar_prefetch=0,
                grid=(B,),
                in_specs=[
                    pl.BlockSpec((1, C, HW), lambda b: (b, 0, 0)),
                    pl.BlockSpec((Cr, C), lambda b: (0, 0)),
                    pl.BlockSpec((C, Cr), lambda b: (0, 0)),
                ],
                out_specs=pl.BlockSpec((1, C, HW), lambda b: (b, 0, 0)),
            ),
            compiler_params=pltpu.CompilerParams(
                dimension_semantics=("parallel",),
                vmem_limit_bytes=_vmem_limit(4 * slab + 2 * w_bytes, vmem_cap)),
            cost_estimate=pl.CostEstimate(
                flops=int(B * C * (3 * HW + 4 * Cr)),
                transcendentals=0,
                bytes_accessed=int(2 * B * C * HW * isz + w_bytes)),
        )(x_flat, w1, w2)
        return out.reshape(B, C, H, W)

    # -------- split fallback: pool kernel -> XLA FCs -> rescale kernel -------
    tc = c_tile if c_tile is not None else _choose_c_tile(
        C, HW, isz, int(0.5 * vmem_cap))
    assert C % tc == 0 and (tc == C or tc % 8 == 0), "invalid c_tile"
    n_c = C // tc

    pool_working = 2 * tc * HW * isz + 2 * tc * 4
    sums = pl.pallas_call(
        _pool_kernel,
        out_shape=jax.ShapeDtypeStruct((B, C, 1), jnp.float32),
        grid_spec=pltpu.PrefetchScalarGridSpec(
            num_scalar_prefetch=0,
            grid=(B, n_c),
            in_specs=[pl.BlockSpec((1, tc, HW), lambda b, c: (b, c, 0))],
            out_specs=pl.BlockSpec((1, tc, 1), lambda b, c: (b, c, 0)),
        ),
        compiler_params=pltpu.CompilerParams(
            dimension_semantics=("parallel", "parallel"),
            vmem_limit_bytes=_vmem_limit(pool_working, vmem_cap)),
        cost_estimate=pl.CostEstimate(
            flops=int(2 * B * C * HW),
            transcendentals=0,
            bytes_accessed=int(B * C * HW * isz + B * C * 4)),
    )(x_flat)

    # Tiny per-batch FCs + hsigmoid as one batched XLA matmul between the two
    # pallas_calls (removes w1/w2 blocks and the finalize branch from the
    # streaming kernels).
    mean = sums[:, :, 0] * (1.0 / HW)                               # (B, C) f32
    hid = jnp.maximum(
        jnp.dot(mean, w1.T, precision=_HIGHEST,
                preferred_element_type=jnp.float32), 0.0)           # (B, Cr)
    z = jnp.dot(hid, w2.T, precision=_HIGHEST,
                preferred_element_type=jnp.float32)                 # (B, C)
    scales = (jnp.clip(z + 3.0, 0.0, 6.0) * (1.0 / 6.0))[:, :, None]

    thw = hw_tile if hw_tile is not None else _choose_hw_tile(
        HW, C, isz, int(0.6 * vmem_cap))
    assert thw == HW or thw % 128 == 0, "hw_tile must be a multiple of 128"
    n_hw = pl.cdiv(HW, thw)

    rescale_working = 4 * C * thw * isz + 2 * C * 4
    out = pl.pallas_call(
        _rescale_kernel,
        out_shape=jax.ShapeDtypeStruct((B, C, HW), x.dtype),
        grid_spec=pltpu.PrefetchScalarGridSpec(
            num_scalar_prefetch=0,
            grid=(B, n_hw),
            in_specs=[
                pl.BlockSpec((1, C, thw), lambda b, h: (b, 0, h)),
                pl.BlockSpec((1, C, 1), lambda b, h: (b, 0, 0)),
            ],
            out_specs=pl.BlockSpec((1, C, thw), lambda b, h: (b, 0, h)),
        ),
        compiler_params=pltpu.CompilerParams(
            # both axes parallel -> uses both v7x TensorCores even when B == 1
            dimension_semantics=("parallel", "parallel"),
            vmem_limit_bytes=_vmem_limit(rescale_working, vmem_cap)),
        cost_estimate=pl.CostEstimate(
            flops=int(B * C * HW),
            transcendentals=0,
            bytes_accessed=int(2 * B * C * HW * isz + B * C * 4)),
    )(x_flat, scales)
    return out.reshape(B, C, H, W)


# ------------------------------- reference -----------------------------------
def se_module_ref(x, w1, w2):
    # pure-JAX reference matching the PyTorch forward
    y = jnp.mean(x, axis=(2, 3))                  # adaptive avg pool 1x1
    y = jnp.maximum(y @ w1.T, 0.0)                # Linear(C, C//r) + ReLU
    y = y @ w2.T                                  # Linear(C//r, C)
    y = jnp.clip(y + 3.0, 0.0, 6.0) / 6.0         # Hsigmoid
    return x * y[:, :, None, None]


if __name__ == "__main__":
    reduction = 4

    # Case 1: lane-friendly HW=256 -> fused path (x crosses HBM twice).
    B, C, H, W = 2, 8, 16, 16
    Cr = C // reduction
    kx, k1, k2 = jax.random.split(jax.random.PRNGKey(0), 3)
    x = jax.random.normal(kx, (B, C, H, W), dtype=jnp.float32)
    w1 = jax.random.normal(k1, (Cr, C), dtype=jnp.float32) * 0.1
    w2 = jax.random.normal(k2, (C, Cr), dtype=jnp.float32) * 0.1

    out = jax.block_until_ready(se_module(x, w1, w2))
    ref = se_module_ref(x, w1, w2)
    assert jnp.allclose(out, ref, atol=1e-5, rtol=1e-5), "fused path mismatch"

    # Case 2: MobileNetV3-like HW=196 (not a multiple of 128), forced through
    # the split path with a 128-lane rescale tile -> exercises the
    # full-HW-per-block pool, the batched XLA FCs, and the partial-last-tile
    # elementwise rescale.
    B2, C2, H2, W2 = 2, 8, 14, 14
    Cr2 = C2 // reduction
    kx2, k12, k22 = jax.random.split(jax.random.PRNGKey(0), 3)
    x2 = jax.random.normal(kx2, (B2, C2, H2, W2), dtype=jnp.float32)
    w12 = jax.random.normal(k12, (Cr2, C2), dtype=jnp.float32) * 0.1
    w22 = jax.random.normal(k22, (C2, Cr2), dtype=jnp.float32) * 0.1

    out2 = jax.block_until_ready(
        se_module(x2, w12, w22, force_split=True, hw_tile=128))
    ref2 = se_module_ref(x2, w12, w22)
    assert jnp.allclose(out2, ref2, atol=1e-5, rtol=1e-5), "split path mismatch"

    # Case 3: B=1 -> exercises the fused-vs-split selection heuristic
    # (split on multi-TensorCore chips, fused otherwise); both are correct.
    B3, C3, H3, W3 = 1, 16, 8, 8
    Cr3 = C3 // reduction
    kx3, k13, k23 = jax.random.split(jax.random.PRNGKey(0), 3)
    x3 = jax.random.normal(kx3, (B3, C3, H3, W3), dtype=jnp.float32)
    w13 = jax.random.normal(k13, (Cr3, C3), dtype=jnp.float32) * 0.1
    w23 = jax.random.normal(k23, (C3, Cr3), dtype=jnp.float32) * 0.1

    out3 = jax.block_until_ready(se_module(x3, w13, w23))
    ref3 = se_module_ref(x3, w13, w23)
    assert jnp.allclose(out3, ref3, atol=1e-5, rtol=1e-5), "B=1 path mismatch"

    print("KERNEL_OK")
</pallas_src>

<mosaic_0001>
module attributes {stable_mosaic.version = 11 : i64} {
  func.func @_fused_se_kernel(%arg0: i32, %arg1: memref<1x8x256xf32, #tpu.memory_space<vmem>>, %arg2: memref<2x8xf32, #tpu.memory_space<vmem>>, %arg3: memref<8x2xf32, #tpu.memory_space<vmem>>, %arg4: memref<1x8x256xf32, #tpu.memory_space<vmem>>) attributes {dimension_semantics = [#tpu.dimension_semantics<parallel>], iteration_bounds = array<i64: 2>, scalar_prefetch = 0 : i64, scratch_operands = 0 : i64, tpu.core_type = #tpu.core_type<tc>, window_params = [{transform_indices = @transform_0, window_bounds = array<i64: 1, 8, 256>}, {pipeline_mode = #tpu.pipeline_mode<synchronous>, transform_indices = @transform_1, window_bounds = array<i64: 2, 8>}, {pipeline_mode = #tpu.pipeline_mode<synchronous>, transform_indices = @transform_2, window_bounds = array<i64: 8, 2>}, {transform_indices = @transform_3, window_bounds = array<i64: 1, 8, 256>}]} {
    %c0 = arith.constant 0 : index
    %c0_0 = arith.constant 0 : index
    %c0_1 = arith.constant 0 : index
    %0 = vector.load %arg1[%c0, %c0_0, %c0_1] : memref<1x8x256xf32, #tpu.memory_space<vmem>>, vector<1x8x256xf32>
    %1 = vector.shape_cast %0 : vector<1x8x256xf32> to vector<8x256xf32>
    %cst = arith.constant 1.000000e+00 : f32
    %2 = vector.broadcast %cst : f32 to vector<256x1xf32>
    %cst_2 = arith.constant dense<0.000000e+00> : vector<8x1xf32>
    %3 = tpu.matmul %1, %2, %cst_2 {dimension_numbers = #tpu.dot_dimension_numbers<[1], [0], [0], [1], [0, 0, 1, 1], [], []>, precision = #tpu.contract_precision<fp32>} : vector<8x256xf32>, vector<256x1xf32>, vector<8x1xf32> -> vector<8x1xf32>
    %cst_3 = arith.constant 3.906250e-03 : f32
    %4 = vector.broadcast %cst_3 : f32 to vector<8x1xf32>
    %5 = arith.mulf %3, %4 : vector<8x1xf32>
    %c0_4 = arith.constant 0 : index
    %c0_5 = arith.constant 0 : index
    %6 = vector.load %arg2[%c0_4, %c0_5] : memref<2x8xf32, #tpu.memory_space<vmem>>, vector<2x8xf32>
    %cst_6 = arith.constant dense<0.000000e+00> : vector<2x1xf32>
    %7 = tpu.matmul %6, %5, %cst_6 {dimension_numbers = #tpu.dot_dimension_numbers<[1], [0], [0], [1], [0, 0, 1, 1], [], []>, precision = #tpu.contract_precision<fp32>} : vector<2x8xf32>, vector<8x1xf32>, vector<2x1xf32> -> vector<2x1xf32>
    %cst_7 = arith.constant 0.000000e+00 : f32
    %8 = vector.broadcast %cst_7 : f32 to vector<2x1xf32>
    %9 = arith.maximumf %7, %8 : vector<2x1xf32>
    %c0_8 = arith.constant 0 : index
    %c0_9 = arith.constant 0 : index
    %10 = vector.load %arg3[%c0_8, %c0_9] : memref<8x2xf32, #tpu.memory_space<vmem>>, vector<8x2xf32>
    %cst_10 = arith.constant dense<0.000000e+00> : vector<8x1xf32>
    %11 = tpu.matmul %10, %9, %cst_10 {dimension_numbers = #tpu.dot_dimension_numbers<[1], [0], [0], [1], [0, 0, 1, 1], [], []>, precision = #tpu.contract_precision<fp32>} : vector<8x2xf32>, vector<2x1xf32>, vector<8x1xf32> -> vector<8x1xf32>
    %cst_11 = arith.constant 3.000000e+00 : f32
    %12 = vector.broadcast %cst_11 : f32 to vector<8x1xf32>
    %13 = arith.addf %11, %12 : vector<8x1xf32>
    %cst_12 = arith.constant 0.000000e+00 : f32
    %cst_13 = arith.constant 6.000000e+00 : f32
    %14 = vector.broadcast %cst_12 : f32 to vector<8x1xf32>
    %15 = arith.maximumf %14, %13 : vector<8x1xf32>
    %16 = vector.broadcast %cst_13 : f32 to vector<8x1xf32>
    %17 = arith.minimumf %16, %15 : vector<8x1xf32>
    %cst_14 = arith.constant 0.166666672 : f32
    %18 = vector.broadcast %cst_14 : f32 to vector<8x1xf32>
    %19 = arith.mulf %17, %18 : vector<8x1xf32>
    %20 = vector.broadcast %19 : vector<8x1xf32> to vector<8x256xf32>
    %21 = arith.mulf %1, %20 : vector<8x256xf32>
    %c0_15 = arith.constant 0 : index
    %c0_16 = arith.constant 0 : index
    %c0_17 = arith.constant 0 : index
    %22 = vector.load %arg4[%c0_15, %c0_16, %c0_17] : memref<1x8x256xf32, #tpu.memory_space<vmem>>, vector<1x8x256xf32>
    %23 = vector.shape_cast %22 : vector<1x8x256xf32> to vector<8x256xf32>
    %24 = vector.shape_cast %21 : vector<8x256xf32> to vector<1x8x256xf32>
    tpu.vector_store %arg4[%c0_15, %c0_16, %c0_17], %24 {strides = array<i32>} : memref<1x8x256xf32, #tpu.memory_space<vmem>>, vector<1x8x256xf32>,
    return
  }
  func.func @transform_0(%arg0: i32) -> (i32, i32, i32) {
    %c0_i32 = arith.constant 0 : i32
    %c0_i32_0 = arith.constant 0 : i32
    %c0_i32_1 = arith.constant 0 : i32
    return %arg0, %c0_i32, %c0_i32_0 : i32, i32, i32
  }
  func.func @transform_1(%arg0: i32) -> (i32, i32) {
    %c0_i32 = arith.constant 0 : i32
    %c0_i32_0 = arith.constant 0 : i32
    %c0_i32_1 = arith.constant 0 : i32
    return %c0_i32, %c0_i32_0 : i32, i32
  }
  func.func @transform_2(%arg0: i32) -> (i32, i32) {
    %c0_i32 = arith.constant 0 : i32
    %c0_i32_0 = arith.constant 0 : i32
    %c0_i32_1 = arith.constant 0 : i32
    return %c0_i32, %c0_i32_0 : i32, i32
  }
  func.func @transform_3(%arg0: i32) -> (i32, i32, i32) {
    %c0_i32 = arith.constant 0 : i32
    %c0_i32_0 = arith.constant 0 : i32
    %c0_i32_1 = arith.constant 0 : i32
    return %arg0, %c0_i32, %c0_i32_0 : i32, i32, i32
  }
}

</mosaic_0001>

<bundles_post_ra>
// kernel: tpu_custom_call.1
= control target key start
LH: loop header
LB: loop body
LE: loop exit
PB: predicated region body
PF: predicated region fallthrough
CT: control target
= control target key end

     0   :  { %8 = vsyncpa [#allocation3], 0  ;;  %s2343_s0 = inlined_call_operand.hbm [shape: f32[2,8,256], index: 0, kind: input, shape index: {}]   ;;  %s2344_s1 = inlined_call_operand.vmem [shape: f32[2,8], index: 1, kind: input, shape index: {}]   ;;  %s2345_s2 = inlined_call_operand.vmem [shape: f32[8,2], index: 2, kind: input, shape index: {}]   ;;  %s2346_s3 = inlined_call_operand.hbm [shape: f32[2,8,256], index: 3, kind: output, shape index: {}]  }
   0x1   :  { %10 = vsyncpa [#allocation3 + $0x1], 0 }
   0x2   :  { %11 = vsyncpa [#allocation4], 0 }
   0x3   :  { %13 = vsyncpa [#allocation4 + $0x1], 0  ;;  %s2016_s12 = smov 0   ;;  %s2018_s13 = smov 0  }
   0x4   :  { %s2020_s14 = smov 0   ;;  %s2022_s15 = smov 0  }
   0x5 LB: > { %s2037_s16 = sadd.s32 4294967295, %s1988_s15   ;;  %s1640_s17 = sadd.s32 4294967294, %s1988_s15   ;;  %s1988_s15 = sphi %s2022_s15, %s2363_s15   ;;  %s1984_s14 = sphi %s2020_s14, %s2362_s14   ;;  %s1980_s13 = sphi %s2018_s13, %s2361_s13   ;;  %s1976_s12 = sphi %s2016_s12, %s2360_s12  }
   0x6   : > { %s2041_s18 = sadd.s32 1, %s1988_s15   ;;  %s26_s19 = sadd.s32 1, %s1984_s14 }
   0x7   : > { %s23_s20 = ssub.s32 %s1988_s15, %s2041_s18  ;;  %p33_p0 = scmp.ne.s32.totalorder %s1984_s14, %s1980_s13 }
   0x8   : > { %p24_p1 = scmp.eq.s32.totalorder %s23_s20, 0  ;;  %p34_p2 = scmp.eq.s32.totalorder %s1988_s15, 0 }
   0x9   : > { %p39_p3 = scmp.ne.s32.totalorder %s1980_s13, %s1976_s12  ;;  %p40_p4 = scmp.eq.s32.totalorder %s2037_s16, 0 }
   0xa   : > { %s2053_s21 = scalar_select %p24_p1, %s1984_s14, %s26_s19  }
   0xb   : > { %p2055_p5 = por %p34_p2, %p33_p0  ;;  %p2059_p6 = por %p40_p4, %p39_p3 }
   0xc   : > { %p105_p7 = scmp.eq.s32.totalorder %s2037_s16, 1  ;;  %p111_p8 = scmp.eq.s32.totalorder %s1640_s17, 1 }
   0xd   : > { %s2350_s23 = scalar_select %p2059_p6, 1, 0 }
   0xe   : > { %p1857_p10 = scmp.lt.s32.totalorder %s1988_s15, 2  ;;  %p2066_p11 = por %p105_p7, %p33_p0 }
   0xf   : > { %p2070_p12 = por %p111_p8, %p39_p3  ;;  %s137_s26 = sand.u32 1, %s1984_s14  }
  0x10   : > { %s2351_s24 = scalar_select %p2066_p11, 1, 0 }
  0x11   : > { %s2352_s25 = scalar_select %p2070_p12, 1, 0 }
  0x12   : > { %s1654_s27 = sshll.u32 %s1988_s15, 8  ;;  %s1643_s28 = sshll.u32 %s137_s26, 4 }
  0x13   : > { %s2079_s4 = scalar_lea.hbm %s2343_s0, %s1654_s27  ;;  %s141_s5 = scalar_lea.vmem [#allocation2], %s1643_s28 }
  0x14   : > { %s149_s6 = sshll.u32 %s141_s5, 4  ;;  %p2083_p13 = pnand %p1857_p10, %p2055_p5  ;;  %s2087_s6 = int_to_ptr.vmem [resolvable:$true] %s149_s6 }
  0x15   : > { %s138_s8 = scalar_lea.sflag [#allocation3], %s137_s26  ;;  %s1896_s9 = scalar_lea.hbm %s2079_s4, 256 }
  0x16   : > { %p1897_p2 = scmp.ne.s32.totalorder %s2079_s4, %s1896_s9  ;;  %p1898_p3 = pneg %p2083_p13 }
  0x17   : > { %s1901_s17 = scalar_lea.hbm %s2343_s0, 512  ;;  %p1902_p5 = scmp.lt.s32.totalorder %s2079_s4, %s2343_s0 }
  0x18   : > { %p1899_p4 = pnand %p1898_p3, %p1897_p2  ;;  %p1903_p8 = scmp.lt.s32.totalorder %s1901_s17, %s1896_s9 }
  0x1a   : > { %p1900_p7 = pneg %p1899_p4  ;;  %p1904_p10 = por %p1903_p8, %p1902_p5 }
  0x1c   : > { %p1905_p9 = pnand %p1904_p10, %p1900_p7 }
  0x1e   : > { %1908 = shalt.err (!%p1905_p9)
}
  0x1f   : > { %s1909_s22 = scalar_lea.vmem %s2087_s6, 256  ;;  %s1990_s26 = smov [#allocation2]  }
  0x20   : > { %p1910_p0 = scmp.ne.s32.totalorder %s2087_s6, %s1909_s22  ;;  %s1914_s27 = sshll.u32 %s1990_s26, 4  ;;  %s1915_s27 = int_to_ptr.vmem [resolvable:$false] %s1914_s27 }
  0x21   : > { %s1916_s28 = scalar_lea.vmem %s1915_s27, 512  ;;  %p1917_p4 = scmp.lt.s32.totalorder %s2087_s6, %s1915_s27 }
  0x22   : > { %p1912_p1 = pnand %p1910_p0, %p1898_p3  ;;  %p1918_p12 = scmp.lt.s32.totalorder %s1916_s28, %s1909_s22 }
  0x24   : > { %p1913_p2 = pneg %p1912_p1  ;;  %p1919_p11 = por %p1918_p12, %p1917_p4 }
  0x26   : > { %p1920_p6 = pnand %p1919_p11, %p1913_p2 }
  0x28   : > { %1923 = shalt.err (!%p1920_p6)
}
  0x29   : > { %1852 = dma.hbm_to_vmem [thread:$0]  (!%p2083_p13), %s2079_s4, 256, %s2087_s6, %s138_s8  }
  0x2a   : > { %p2354_p9 = scmp.lt.s32.totalorder %s1988_s15, 3  ;;  %p2355_p7 = scmp.ge.s32.totalorder %s1988_s15, 1 }
  0x2c   : > { %p155_p0 = pnand %p2355_p7, %p2354_p9 }
  0x2d   : > { %s2114_s29 = sand.u32 (!%p155_p0), 1, %s1980_s13   ;;  %p2356_p6 = scmp.ne.s32.totalorder (!%p155_p0), %s2350_s23, 0 }
  0x2e   : > { %158 = sbr.rel (%p155_p0) target bundleno = 906 (0x38a), region = 32  ;;  %s1647_s30 = sshll.u32 (!%p155_p0), %s2114_s29, 4 }
  0x2f   : > { %s161_s5 = scalar_lea.sflag (!%p155_p0), [#allocation3], %s2114_s29  ;;  %s164_s7 = scalar_lea.vmem (!%p155_p0), [#allocation2], %s1647_s30 }
  0x33   : > { %1967 = dma.done.wait (%p2356_p6), %s161_s5, 256  }
  0x34   : > { %1969 = vsyncadd (%p2356_p6), %s161_s5, 4294967040  ;;  %v1991_v0 = vmov 1.0   ;;  %v1992_v1 = vmov 0.0   ;;  %v2134_v2 = vld [vmem:[%s164_s7 + $0x8] sm:$0xff]  ;;  %v2136_v3 = vld [vmem:[%s164_s7] sm:$0xff]  ;;  %vm1993_vm0 = vmmov 0  }
  0x35   : > { %1656 = vmatprep.subr.mxu0 %v1991_v0  ;;  %299 = vmatprep.subr.mxu1 %v1992_v1  ;;  %v2140_v4 = vand.u32 4294901760, %v2134_v2  ;;  %v2143_v5 = vand.u32 4294901760, %v2136_v3  ;;  %v636_v22 = vld [vmem:[%s2344_s1] sm:$0x3]  ;;  %vm637_vm1 = vcmask 64512   ;;  %vm1089_vm2 = vcmask 15360  }
  0x36   : > { %1657 = vmatpush3.msra.mxu0 %v1991_v0  ;;  %300 = vmatpush1.msra.mxu1 %v1992_v1  ;;  %v639_v25 = vsel %vm637_vm1, %v636_v22, 0  ;;  %v1088_v49 = vld [vmem:[%s2345_s2] sm:$0xff]  ;;  %vm1093_vm3 = vcmask 1041408   ;;  %s1655_s9 = sshll.u32 %s2037_s16, 8  ;;  %s186_s10 = scalar_lea.vmem [#allocation5], %s1647_s30 }
  0x37   : > { %1658 = vmatprep.subr.mxu0 %v1991_v0  ;;  %371 = vmatprep.subr.mxu1 %v1992_v1  ;;  %v2150_v6 = vsub.f32 %v2134_v2, %v2140_v4  ;;  %v2156_v7 = vsub.f32 %v2136_v3, %v2143_v5  ;;  %v707_v27 = vand.u32 4294901760, %v639_v25  ;;  %v1091_v52 = vsel %vm1089_vm2, %v1088_v49, 0  ;;  %s1570_s11 = sshll.u32 %s186_s10, 4  ;;  %s2306_s20 = scalar_lea.hbm %s2346_s3, %s1655_s9  ;;  %s1571_s11 = int_to_ptr.vmem [resolvable:$true] %s1570_s11 }
  0x38   : > { %1659 = vmatpush3.msra.mxu0 %v1991_v0  ;;  %334 = vmatprep.mubr.f32.mxu1 %v2140_v4  ;;  %v1163_v54 = vand.u32 4294901760, %v1091_v52  ;;  %s1556_s22 = scalar_lea.sflag [#allocation4], %s2114_s29  ;;  %s1924_s26 = scalar_lea.vmem %s1571_s11, 256 }
  0x39   : > { %1660 = vmatprep.subr.mxu0 %v1991_v0  ;;  %336 = vmatmul.mubr.f32.vlgmr.msra.gmra.mxu1 %v2143_v5  ;;  %v255_v8 = vand.u32 4294901760, %v2150_v6  ;;  %v261_v9 = vand.u32 4294901760, %v2156_v7  ;;  %v708_v30 = vsub.f32 %v639_v25, %v707_v27  ;;  %p1925_p11 = scmp.ne.s32.totalorder %s1571_s11, %s1924_s26  ;;  %p2357_p12 = scmp.ne.s32.totalorder %s2351_s24, 0 }
  0x3a   : > { %1661 = vmatpush3.msra.mxu0 %v1991_v0  ;;  %372 = vmatpush1.msra.mxu1 %v1992_v1  ;;  %v1164_v58 = vsub.f32 %v1091_v52, %v1163_v54  ;;  %s1995_s16 = smov [#allocation5]  }
  0x3b   : > { %1662 = vmatprep.subr.mxu0 %v1991_v0  ;;  %407 = vmatprep.mubr.f32.mxu1 %v2150_v6  ;;  %v256_v10 = vsub.f32 %v2150_v6, %v255_v8  ;;  %v262_v11 = vsub.f32 %v2156_v7, %v261_v9  ;;  %v709_v34 = vand.u32 4294901760, %v708_v30  ;;  %p1926_p13 = pnand %p1925_p11, %p2357_p12  ;;  %s1928_s27 = sshll.u32 %s1995_s16, 4  ;;  %s1929_s27 = int_to_ptr.vmem [resolvable:$false] %s1928_s27 }
  0x3c   : > { %1663 = vmatpush3.msra.mxu0 %v1991_v0  ;;  %1691 = vmatprep.subr.mxu1 %v1991_v0  ;;  %v1165_v63 = vand.u32 4294901760, %v1164_v58  ;;  %s1930_s28 = scalar_lea.vmem %s1929_s27, 512  ;;  %p1931_p3 = scmp.lt.s32.totalorder %s1571_s11, %s1929_s27 }
  0x3d   : > { %1664 = vmatprep.subr.mxu0 %v1991_v0  ;;  %410 = vmatmul.mubr.f32.vlgmr.msra.gmra.mxu1 %v2156_v7  ;;  %v257_v12 = vand.u32 4294901760, %v256_v10  ;;  %v263_v13 = vand.u32 4294901760, %v262_v11  ;;  %v710_v38 = vsub.f32 %v708_v30, %v709_v34  ;;  %p1927_p1 = pneg %p1926_p13  ;;  %p1932_p5 = scmp.lt.s32.totalorder %s1930_s28, %s1924_s26 }
  0x3e   : > { %1665 = vmatpush3.msra.mxu0 %v1991_v0  ;;  %1692 = vmatpush3.msra.mxu1 %v1991_v0  ;;  %v1166_v7 = vsub.f32 %v1164_v58, %v1165_v63 }
  0x3f   : > { %1666 = vmatprep.subr.mxu0 %v1991_v0  ;;  %1693 = vmatprep.subr.mxu1 %v1991_v0  ;;  %v711_v41 = vand.u32 4294901760, %v710_v38  ;;  %p1933_p8 = por %p1932_p5, %p1931_p3 }
  0x40   : > { %1667 = vmatpush3.msra.mxu0 %v1991_v0  ;;  %1694 = vmatpush3.msra.mxu1 %v1991_v0  ;;  %v1167_v11 = vand.u32 4294901760, %v1166_v7 }
  0x41   : > { %1668 = vmatprep.subr.mxu0 %v1991_v0  ;;  %1695 = vmatprep.subr.mxu1 %v1991_v0  ;;  %p1934_p10 = pnand %p1933_p8, %p1927_p1 }
  0x42   : > { %1669 = vmatpush3.msra.mxu0 %v1991_v0  ;;  %1696 = vmatpush3.msra.mxu1 %v1991_v0 }
  0x43   : > { %1670 = vmatprep.subr.mxu0 %v1991_v0  ;;  %1697 = vmatprep.subr.mxu1 %v1991_v0 }
  0x44   : > { %1671 = vmatpush3.msra.mxu0 %v1991_v0  ;;  %1698 = vmatpush3.msra.mxu1 %v1991_v0 }
  0x45   : > { %1672 = vmatprep.subr.mxu0 %v1991_v0  ;;  %1699 = vmatprep.subr.mxu1 %v1991_v0 }
  0x46   : > { %1673 = vmatpush3.msra.mxu0 %v1991_v0  ;;  %1700 = vmatpush3.msra.mxu1 %v1991_v0 }
  0x47   : > { %1674 = vmatprep.subr.mxu0 %v1991_v0  ;;  %1701 = vmatprep.subr.mxu1 %v1991_v0 }
  0x48   : > { %1675 = vmatpush3.msra.mxu0 %v1991_v0  ;;  %1702 = vmatpush3.msra.mxu1 %v1991_v0 }
  0x49   : > { %1676 = vmatprep.subr.mxu0 %v1991_v0  ;;  %1703 = vmatprep.subr.mxu1 %v1991_v0 }
  0x4a   : > { %1677 = vmatpush3.msra.mxu0 %v1991_v0  ;;  %1704 = vmatpush3.msra.mxu1 %v1991_v0 }
  0x4b   : > { %1678 = vmatprep.subr.mxu0 %v1991_v0  ;;  %1705 = vmatprep.subr.mxu1 %v1991_v0 }
  0x4c   : > { %1679 = vmatpush3.msra.mxu0 %v1991_v0  ;;  %1706 = vmatpush3.msra.mxu1 %v1991_v0 }
  0x4d   : > { %1680 = vmatprep.subr.mxu0 %v1991_v0  ;;  %1707 = vmatprep.subr.mxu1 %v1991_v0 }
  0x4e   : > { %1681 = vmatpush3.msra.mxu0 %v1991_v0  ;;  %1708 = vmatpush3.msra.mxu1 %v1991_v0 }
  0x4f   : > { %1682 = vmatprep.subr.mxu0 %v1991_v0  ;;  %258 = vmatprep.mubr.f32.mxu0 %v257_v12 }
  0x50   : > { %1683 = vmatpush3.msra.mxu0 %v1991_v0  ;;  %1709 = vmatprep.subr.mxu1 %v1991_v0 }
  0x51   : > { %1684 = vmatprep.subr.mxu0 %v1991_v0  ;;  %1710 = vmatpush3.msra.mxu1 %v1991_v0 }
  0x52   : > { %1685 = vmatpush3.msra.mxu0 %v1991_v0  ;;  %1711 = vmatprep.subr.mxu1 %v1991_v0 }
  0x53   : > { %1686 = vmatprep.subr.mxu0 %v1991_v0  ;;  %1712 = vmatpush3.msra.mxu1 %v1991_v0 }
  0x54   : > { %1687 = vmatpush3.msra.mxu0 %v1991_v0  ;;  %1713 = vmatprep.subr.mxu1 %v1991_v0 }
  0x55   : > { %264 = vmatmul.mubr.f32.vlgmr.msra.gmra.mxu0 %v263_v13  ;;  %521 = vmatprep.subr.mxu0 %v1992_v1 }
  0x56   : > { %522 = vmatpush1.msra.mxu0 %v1992_v1  ;;  %556 = vmatprep.mubr.f32.mxu0 %v2140_v4 }
  0x57   : > { %1726 = vmatprep.subr.mxu0 %v1991_v0  ;;  %1714 = vmatpush3.msra.mxu1 %v1991_v0 }
  0x58   : > { %1715 = vmatprep.subr.mxu1 %v1991_v0  ;;  %482 = vmatprep.mubr.f32.mxu1 %v255_v8 }
  0x59   : > { %558 = vmatmul.mubr.f32.vlgmr.msra.gmra.mxu0 %v2143_v5  ;;  %1716 = vmatpush3.msra.mxu1 %v1991_v0 }
  0x5a   : > { %1727 = vmatpush3.msra.mxu0 %v1991_v0  ;;  %1717 = vmatprep.subr.mxu1 %v1991_v0 }
  0x5b   : > { %1728 = vmatprep.subr.mxu0 %v1991_v0  ;;  %1718 = vmatpush3.msra.mxu1 %v1991_v0 }
  0x5c   : > { %1729 = vmatpush3.msra.mxu0 %v1991_v0  ;;  %1719 = vmatprep.subr.mxu1 %v1991_v0 }
  0x5d   : > { %1730 = vmatprep.subr.mxu0 %v1991_v0  ;;  %1720 = vmatpush3.msra.mxu1 %v1991_v0 }
  0x5e   : > { %1731 = vmatpush3.msra.mxu0 %v1991_v0  ;;  %1721 = vmatprep.subr.mxu1 %v1991_v0 }
  0x5f   : > { %1732 = vmatprep.subr.mxu0 %v1991_v0  ;;  %1722 = vmatpush3.msra.mxu1 %v1991_v0 }
  0x60   : > { %1733 = vmatpush3.msra.mxu0 %v1991_v0  ;;  %486 = vmatmul.mubr.f32.vlgmr.msra.gmra.mxu1 %v261_v9 }
  0x61   : > { %1734 = vmatprep.subr.mxu0 %v1991_v0  ;;  %628 = vmatprep.mubr.f32.mxu0 %v2140_v4 }
  0x62   : > { %1735 = vmatpush3.msra.mxu0 %v1991_v0  ;;  %1785 = vmatprep.subr.mxu1 %v1992_v1 }
  0x63   : > { %1736 = vmatprep.subr.mxu0 %v1991_v0  ;;  %1787 = vmatprep.mubr.msk.f32.mxu1 %vm1993_vm0, %v1992_v1 }
  0x64   : > { %1737 = vmatpush3.msra.mxu0 %v1991_v0 }
  0x65   : > { %1738 = vmatprep.subr.mxu0 %v1991_v0 }
  0x66   : > { %1739 = vmatpush3.msra.mxu0 %v1991_v0 }
  0x67   : > { %1740 = vmatprep.subr.mxu0 %v1991_v0 }
  0x68   : > { %1741 = vmatpush3.msra.mxu0 %v1991_v0 }
  0x69   : > { %1742 = vmatprep.subr.mxu0 %v1991_v0 }
  0x6a   : > { %1743 = vmatpush3.msra.mxu0 %v1991_v0 }
  0x6b   : > { %1744 = vmatprep.subr.mxu0 %v1991_v0 }
  0x6c   : > { %1745 = vmatpush3.msra.mxu0 %v1991_v0 }
  0x6d   : > { %1746 = vmatprep.subr.mxu0 %v1991_v0 }
  0x6e   : > { %1747 = vmatpush3.msra.mxu0 %v1991_v0 }
  0x6f   : > { %1748 = vmatprep.subr.mxu0 %v1991_v0 }
  0x70   : > { %1749 = vmatpush3.msra.mxu0 %v1991_v0 }
  0x71   : > { %1750 = vmatprep.subr.mxu0 %v1991_v0 }
  0x72   : > { %1751 = vmatpush3.msra.mxu0 %v1991_v0 }
  0x73   : > { %1752 = vmatprep.subr.mxu0 %v1991_v0 }
  0x74   : > { %1753 = vmatpush3.msra.mxu0 %v1991_v0 }
  0x75   : > { %1754 = vmatprep.subr.mxu0 %v1991_v0 }
  0x76   : > { %1755 = vmatpush3.msra.mxu0 %v1991_v0 }
  0x77   : > { %1756 = vmatprep.subr.mxu0 %v1991_v0 }
  0x78   : > { %1757 = vmatpush3.msra.mxu0 %v1991_v0 }
  0x79   : > { %630 = vmatmul.mubr.f32.vlgmr.msra.gmra.mxu0 %v2143_v5  ;;  %1825 = vmatprep.subr.mxu0 %v1992_v1 }
  0x7a   : > { %1827 = vmatprep.mubr.msk.f32.mxu0 %vm1993_vm0, %v1992_v1 }
  0xf9   : > { %v337_v14 = vpop.f32.mrf.mxu1 }
  0xfb   : > { %v339_v15 = vpop.f32.mrf.mxu1 }
  0xfd   : > { %v411_v16 = vpop.f32.mrf.mxu1 }
  0xff   : > { %v413_v17 = vpop.f32.mrf.mxu1 }
 0x100   : > { %v1994_v17 = vmov 0  }
 0x101   : > { %1895 = vset.pattern.permute.xlu0 %v1994_v17 }
 0x115   : > { %v1688_v18 = vpop.f32.mrf.mxu0 }
 0x117   : > { %v1689_v19 = vpop.f32.mrf.mxu0 }
 0x118   : > { %v1690_v24 = vadd.f32 %v1689_v19, %v1688_v18 }
 0x119   : > { %v559_v20 = vpop.f32.mrf.mxu0 }
 0x11a   : > { %v338_v28 = vadd.f32 %v1690_v24, %v337_v14 }
 0x11b   : > { %v561_v21 = vpop.f32.mrf.mxu0 }
 0x11c   : > { %v412_v31 = vadd.f32 %v411_v16, %v338_v28 }
 0x120   : > { %v1723_v23 = vpop.f32.mrf.mxu1 }
 0x122   : > { %v1724_v26 = vpop.f32.mrf.mxu1 }
 0x123   : > { %v1725_v29 = vadd.f32 %v1724_v26, %v1723_v23 }
 0x125   : > { %v488_v32 = vadd.f32 %v1725_v29, %v412_v31 }
 0x127   : > { %v560_v36 = vadd.f32 %v559_v20, %v488_v32 }
 0x139   : > { %v1758_v33 = vpop.f32.mrf.mxu0 }
 0x13b   : > { %v1759_v35 = vpop.f32.mrf.mxu0 }
 0x13c   : > { %v1760_v37 = vadd.f32 %v1759_v35, %v1758_v33 }
 0x13e   : > { %v632_v39 = vadd.f32 %v1760_v37, %v560_v36 }
 0x140   : > { %v635_v40 = vmul.f32 0.00390625, %v632_v39 }
 0x142   : > { %v672_v42 = vand.u32 4294901760, %v635_v40 }
 0x144   : > { %v749_v43 = vsub.f32 %v635_v40, %v672_v42  ;;  %1786 = vmatpush3.msra.mxu1 %v672_v42 }
 0x145   : > { %1788 = vmatmul.mubr.f32.vlgmr.msra.gmra.mxu1 %v711_v41  ;;  %1790 = vmatprep.subr.mxu1 %v1992_v1 }
 0x146   : > { %v750_v44 = vand.u32 4294901760, %v749_v43  ;;  %1792 = vmatprep.mubr.msk.f32.mxu1 %vm1993_vm0, %v1992_v1 }
 0x148   : > { %v751_v45 = vsub.f32 %v749_v43, %v750_v44 }
 0x14a   : > { %v752_v46 = vand.u32 4294901760, %v751_v45 }
 0x14c   : > { %1791 = vmatpush3.msra.mxu1 %v752_v46 }
 0x14d   : > { %1793 = vmatmul.mubr.f32.vlgmr.msra.gmra.mxu1 %v707_v27  ;;  %1795 = vmatprep.subr.mxu1 %v1992_v1 }
 0x14e   : > { %1796 = vmatpush3.msra.mxu1 %v749_v43  ;;  %1797 = vmatprep.mubr.msk.f32.mxu1 %vm1993_vm0, %v1992_v1 }
 0x14f   : > { %1800 = vmatprep.subr.mxu1 %v1992_v1 }
 0x151   : > { %1798 = vmatmul.mubr.f32.vlgmr.msra.gmra.mxu1 %v708_v30 }
 0x152   : > { %1801 = vmatpush3.msra.mxu1 %v672_v42  ;;  %1802 = vmatprep.mubr.msk.f32.mxu1 %vm1993_vm0, %v1992_v1 }
 0x153   : > { %1805 = vmatprep.subr.mxu1 %v1992_v1 }
 0x155   : > { %1803 = vmatmul.mubr.f32.vlgmr.msra.gmra.mxu1 %v709_v34 }
 0x156   : > { %1806 = vmatpush3.msra.mxu1 %v750_v44  ;;  %1807 = vmatprep.mubr.msk.f32.mxu1 %vm1993_vm0, %v1992_v1 }
 0x157   : > { %1810 = vmatprep.subr.mxu1 %v1992_v1 }
 0x159   : > { %1808 = vmatmul.mubr.f32.vlgmr.msra.gmra.mxu1 %v707_v27 }
 0x15a   : > { %1811 = vmatpush3.msra.mxu1 %v672_v42  ;;  %1812 = vmatprep.mubr.msk.f32.mxu1 %vm1993_vm0, %v1992_v1 }
 0x15b   : > { %1815 = vmatprep.subr.mxu1 %v1992_v1 }
 0x15d   : > { %1813 = vmatmul.mubr.f32.vlgmr.msra.gmra.mxu1 %v707_v27 }
 0x15e   : > { %1817 = vmatprep.mubr.msk.f32.mxu1 %vm1993_vm0, %v1992_v1 }
 0x205   : > { %v713_v47 = vpop.f32.mrf.mxu1 }
 0x207   : > { %v1789_v48 = vpop.f32.mrf.mxu1 }
 0x20d   : > { %v789_v50 = vpop.f32.mrf.mxu1 }
 0x20e   : > { %v790_v57 = vadd.f32 %v789_v50, %v713_v47 }
 0x20f   : > { %v1794_v51 = vpop.f32.mrf.mxu1 }
 0x211   : > { %v863_v53 = vpop.f32.mrf.mxu1 }
 0x212   : > { %v864_v60 = vadd.f32 %v863_v53, %v790_v57 }
 0x213   : > { %v1799_v55 = vpop.f32.mrf.mxu1 }
 0x215   : > { %v937_v56 = vpop.f32.mrf.mxu1 }
 0x216   : > { %v938_v62 = vadd.f32 %v937_v56, %v864_v60 }
 0x217   : > { %v1804_v59 = vpop.f32.mrf.mxu1 }
 0x219   : > { %v1011_v61 = vpop.f32.mrf.mxu1 }
 0x21a   : > { %v1012_v4 = vadd.f32 %v1011_v61, %v938_v62 }
 0x21b   : > { %v1809_v0 = vpop.f32.mrf.mxu1 }
 0x21d   : > { %v1083_v5 = vpop.f32.mrf.mxu1 }
 0x21e   : > { %v1084_v6 = vadd.f32 %v1083_v5, %v1012_v4 }
 0x21f   : > { %v1814_v8 = vpop.f32.mrf.mxu1 }
 0x220   : > { %v1087_v9 = vmax.f32 %v1084_v6, 0.0 }
 0x222   : > { %v1095_v10 = vsel %vm1093_vm3, %v1087_v9, 0 }
 0x223   : > { %v1128_v12 = vand.u32 4294901760, %v1095_v10 }
 0x225   : > { %v1205_v13 = vsub.f32 %v1095_v10, %v1128_v12  ;;  %1816 = vmatpush3.msra.mxu1 %v1128_v12 }
 0x226   : > { %1818 = vmatmul.mubr.f32.vlgmr.msra.gmra.mxu1 %v1167_v11  ;;  %1820 = vmatprep.subr.mxu1 %v1992_v1 }
 0x227   : > { %1826 = vmatpush3.msra.mxu0 %v1205_v13  ;;  %v1206_v14 = vand.u32 4294901760, %v1205_v13  ;;  %1822 = vmatprep.mubr.msk.f32.mxu1 %vm1993_vm0, %v1992_v1 }
 0x228   : > { %1835 = vmatprep.subr.mxu0 %v1992_v1  ;;  %1828 = vmatmul.mubr.f32.vlgmr.msra.gmra.mxu0 %v1164_v58 }
 0x229   : > { %1836 = vmatpush3.msra.mxu0 %v1206_v14  ;;  %v1207_v15 = vsub.f32 %v1205_v13, %v1206_v14  ;;  %1837 = vmatprep.mubr.msk.f32.mxu0 %vm1993_vm0, %v1992_v1 }
 0x22b   : > { %v1208_v16 = vand.u32 4294901760, %v1207_v15 }
 0x22c   : > { %1838 = vmatmul.mubr.f32.vlgmr.msra.gmra.mxu0 %v1163_v54 }
 0x22d   : > { %1821 = vmatpush3.msra.mxu1 %v1208_v16 }
 0x22e   : > { %1823 = vmatmul.mubr.f32.vlgmr.msra.gmra.mxu1 %v1163_v54  ;;  %1830 = vmatprep.subr.mxu1 %v1992_v1 }
 0x22f   : > { %1831 = vmatpush3.msra.mxu1 %v1128_v12  ;;  %1832 = vmatprep.mubr.msk.f32.mxu1 %vm1993_vm0, %v1992_v1 }
 0x230   : > { %1840 = vmatprep.subr.mxu1 %v1992_v1 }
 0x232   : > { %1833 = vmatmul.mubr.f32.vlgmr.msra.gmra.mxu1 %v1165_v63 }
 0x233   : > { %1841 = vmatpush3.msra.mxu1 %v1128_v12  ;;  %1842 = vmatprep.mubr.msk.f32.mxu1 %vm1993_vm0, %v1992_v1 }
 0x236   : > { %1843 = vmatmul.mubr.f32.vlgmr.msra.gmra.mxu1 %v1163_v54 }
 0x2e6   : > { %v1169_v18 = vpop.f32.mrf.mxu1 }
 0x2e7   : > { %v1170_v23 = vadd.f32 3.0, %v1169_v18 }
 0x2e8   : > { %v1819_v19 = vpop.f32.mrf.mxu1  ;;  %v1319_v20 = vpop.f32.mrf.mxu0 }
 0x2ea   : > { %v1829_v21 = vpop.f32.mrf.mxu0 }
 0x2ec   : > { %v1467_v22 = vpop.f32.mrf.mxu0 }
 0x2ee   : > { %v1245_v24 = vpop.f32.mrf.mxu1  ;;  %v1839_v25 = vpop.f32.mrf.mxu0 }
 0x2ef   : > { %v1246_v26 = vadd.f32 %v1245_v24, %v1170_v23 }
 0x2f0   : > { %v1824_v27 = vpop.f32.mrf.mxu1 }
 0x2f1   : > { %v1320_v28 = vadd.f32 %v1319_v20, %v1246_v26 }
 0x2f2   : > { %v1393_v29 = vpop.f32.mrf.mxu1 }
 0x2f3   : > { %v1394_v30 = vadd.f32 %v1393_v29, %v1320_v28 }
 0x2f4   : > { %v1834_v31 = vpop.f32.mrf.mxu1 }
 0x2f5   : > { %v1468_v1 = vadd.f32 %v1467_v22, %v1394_v30 }
 0x2f6   : > { %v1539_v32 = vpop.f32.mrf.mxu1 }
 0x2f7   : > { %v1540_v33 = vadd.f32 %v1539_v32, %v1468_v1 }
 0x2f8   : > { %v1844_v34 = vpop.f32.mrf.mxu1 }
 0x2f9   : > { %v1543_v35 = vmax.f32 %v1540_v33, 0.0 }
 0x2fb   : > { %v1544_v36 = vmin.f32 %v1543_v35, 6.0 }
 0x2fd   : > { %v1545_v37 = vmul.f32 0.16666667, %v1544_v36 }
 0x2ff   : > { %1548 = vperm.xlu0 %1895, %v1545_v37  }
 0x37a   : > { %v1549_v38 = vpop.permute.xlu0 %1548 }
 0x37b   : > { %v1551_v39 = vmul.f32 %v1549_v38, %v2136_v3  ;;  %v1552_v40 = vmul.f32 %v1549_v38, %v2134_v2 }
 0x37d   : > { %1553 = vst [vmem:[%s186_s10] sm:$0xff] %v1551_v39  ;;  %1554 = vst [vmem:[%s186_s10 + $0x8] sm:$0xff] %v1552_v40 }
 0x37e   : > { %1937 = shalt.err (!%p1934_p10)
}
 0x37f   : > { %s1938_s30 = scalar_lea.hbm %s2306_s20, 256  ;;  %s1942_s7 = scalar_lea.hbm %s2346_s3, 512 }
 0x380   : > { %p1939_p2 = scmp.ne.s32.totalorder %s2306_s20, %s1938_s30  ;;  %p1943_p7 = scmp.lt.s32.totalorder %s2306_s20, %s2346_s3 }
 0x381   : > { %p1944_p0 = scmp.lt.s32.totalorder %s1942_s7, %s1938_s30 }
 0x382   : > { %p1940_p4 = pnand %p1939_p2, %p2357_p12 }
 0x383   : > { %p1945_p6 = por %p1944_p0, %p1943_p7 }
 0x384   : > { %p1941_p9 = pneg %p1940_p4 }
 0x386   : > { %p1946_p11 = pnand %p1945_p6, %p1941_p9 }
 0x388   : > { %1949 = shalt.err (!%p1946_p11)
}
 0x389   : > { %1847 = dma.vmem_to_hbm [thread:$0]  (%p2357_p12), %s1571_s11, 256, %s2306_s20, %s1556_s22  }
 0x38a PF: > { %s1582_s6 = sand.u32 1, %s1976_s12   ;;  %p2358_p13 = scmp.ne.s32.totalorder %s2352_s25, 0 }
 0x38b   : > { %p2359_p1 = scmp.ge.s32.totalorder %s1988_s15, 2  ;;  %s1583_s8 = scalar_lea.sflag [#allocation4], %s1582_s6 }
 0x38d   : > { %p1854_p3 = pnand %p2359_p1, %p2358_p13 }
 0x38f   : > { %p1855_p5 = pneg %p1854_p3 }
 0x391   : > { %1971 = dma.done.wait (%p1855_p5), %s1583_s8, 256  }
 0x392   : > { %1973 = vsyncadd (%p1855_p5), %s1583_s8, 4294967040  ;;  %p16_p8 = scmp.ge.s32.totalorder %s2041_s18, 4   ;;  %s2360_s12 = smov %s1980_s13 }
 0x393   : > { %s2361_s13 = smov %s1984_s14  ;;  %s2362_s14 = smov %s2053_s21 }
 0x394   : > { %s2363_s15 = smov %s2041_s18  ;;  %18 = sbr.rel (!%p16_p8) target bundleno = 5 (0x5), region = 77 }
 0x399   :  { %1588 = vsyncpa [#allocation3], 1 }
 0x39a   :  { %1590 = vsyncpa [#allocation3 + $0x1], 1 }
 0x39b   :  { %1591 = vsyncpa [#allocation4], 1 }
 0x39c   :  { %1593 = vsyncpa [#allocation4 + $0x1], 1 }

</bundles_post_ra>
